<compile_context>
chip_gen: v5e
topology: v5e:2x2
jax: 0.10.0
libtpu: 0.0.40
codegen_flags: <defaults>
</compile_context>

<pallas_src>
import jax
import jax.numpy as jnp
import numpy as np
from jax import lax
from jax.experimental import pallas as pl
from jax.experimental.pallas import tpu as pltpu


def _make_kernel(n, tn, steps_half, needs_mask):
    """Kernel factory closing over static tiling parameters."""

    def kernel(uvw_ref, pf_ref, pb_ref, x_ref, out_ref,
               acc_ddf, acc_dxf, acc_ddb, acc_dxb, acc_xx):
        i = pl.program_id(1)          # reduction step within this half of N

        @pl.when(i == 0)
        def _init():
            acc_ddf[...] = jnp.zeros_like(acc_ddf)
            acc_dxf[...] = jnp.zeros_like(acc_dxf)
            acc_ddb[...] = jnp.zeros_like(acc_ddb)
            acc_dxb[...] = jnp.zeros_like(acc_dxb)
            acc_xx[...] = jnp.zeros_like(acc_xx)

        uvw = uvw_ref[...]                                  # [6, TN]  (fwd u,v,w | bwd u,v,w)
        uf = jnp.concatenate([uvw[0:3]] * 8, axis=0)        # [24, TN] row k -> component k%3
        ub = jnp.concatenate([uvw[3:6]] * 8, axis=0)        # [24, TN]
        x = x_ref[...]                                      # [24, TN] row k = (anchor k//3, comp k%3)
        d_f = uf - pf_ref[...]                              # [24, TN]
        d_b = ub - pb_ref[...]                              # [24, TN]

        if needs_mask:
            # Zero out tail lanes past N (also neutralizes the fully-masked duplicate
            # tile when the tile count is odd and both halves read the clamped block).
            start = (pl.program_id(0) * steps_half + i) * tn
            lane = lax.broadcasted_iota(jnp.int32, (24, tn), 1)
            m = lane < (n - start)
            d_f = jnp.where(m, d_f, 0.0)
            d_b = jnp.where(m, d_b, 0.0)
            x = jnp.where(m, x, 0.0)

        # Per-lane linear partial sums: pure VPU multiply-adds, no per-step XLU reduce.
        acc_ddf[...] += d_f * d_f
        acc_dxf[...] += d_f * x
        acc_ddb[...] += d_b * d_b
        acc_dxb[...] += d_b * x
        acc_xx[...] += x * x

        @pl.when(i == pl.num_programs(1) - 1)
        def _finalize():
            # One cross-lane reduction per accumulator, once per half of N.
            out_ref[0] = jnp.concatenate(
                [jnp.sum(acc_ddf[...], axis=1, keepdims=True),
                 jnp.sum(acc_dxf[...], axis=1, keepdims=True),
                 jnp.sum(acc_ddb[...], axis=1, keepdims=True),
                 jnp.sum(acc_dxb[...], axis=1, keepdims=True),
                 jnp.sum(acc_xx[...], axis=1, keepdims=True)], axis=1)   # [24, 5]

    return kernel


def relative_positional_loss(uvw_f, uvw_b, uvw_p_f, uvw_p_b, xyz_p, weight,
                             *, block_n=8192):
    """Pallas equivalent of RelativePositionalLoss.forward.

    Shapes (PyTorch conventions):
      uvw_f, uvw_b     : [N, 3]
      uvw_p_f, uvw_p_b : [8, 3, N]
      xyz_p            : [N, 8, 3]
    Returns a scalar float32 loss.
    """
    uvw_f = jnp.asarray(uvw_f, jnp.float32)
    uvw_b = jnp.asarray(uvw_b, jnp.float32)
    uvw_p_f = jnp.asarray(uvw_p_f, jnp.float32)
    uvw_p_b = jnp.asarray(uvw_p_b, jnp.float32)
    xyz_p = jnp.asarray(xyz_p, jnp.float32)

    n = uvw_f.shape[0]

    # Free (contiguous) reshapes: row k = (anchor a = k // 3, component c = k % 3).
    p_f = uvw_p_f.reshape(24, n)
    p_b = uvw_p_b.reshape(24, n)
    # TODO(synk): produce/cache xyz targets upstream in this lane-dense [24, N] layout
    # (and consider bf16 staging of anchors/targets); this transpose is the one
    # remaining relayout copy in the wrapper.
    xyz = jnp.transpose(xyz_p.reshape(n, 24))              # [24, N]
    uvw = jnp.concatenate([uvw_f.T, uvw_b.T], axis=0)      # [6, N]  (tiny)

    # Lane tiling.  block_n=8192 keeps VMEM (~9 MB incl. double buffering + scratch)
    # within v5e's 16 MiB scoped default; it is already at HBM roofline on v6e/v7x.
    n128 = ((n + 127) // 128) * 128
    tn = min(max(block_n, 128), n128)
    tn = ((tn + 127) // 128) * 128
    steps_total = (n + tn - 1) // tn
    steps_half = (steps_total + 1) // 2            # inner (reduction) steps per core
    needs_mask = (2 * steps_half * tn) != n

    def blk(s, i):
        # Clamp so the (possibly) extra step of the second half never maps a block
        # fully past the array; its contribution is masked to zero in-kernel.
        return (0, jnp.minimum(s * steps_half + i, steps_total - 1))

    kernel = _make_kernel(n, tn, steps_half, needs_mask)

    partials = pl.pallas_call(
        kernel,
        out_shape=jax.ShapeDtypeStruct((2, 24, 5), jnp.float32),
        grid=(2, steps_half),
        in_specs=[
            pl.BlockSpec((6, tn), blk),        # uvw: fwd u,v,w then bwd u,v,w
            pl.BlockSpec((24, tn), blk),       # fwd anchors, rows = (anchor, comp)
            pl.BlockSpec((24, tn), blk),       # bwd anchors
            pl.BlockSpec((24, tn), blk),       # xyz targets, rows = (anchor, comp)
        ],
        out_specs=pl.BlockSpec((1, 24, 5), lambda s, i: (s, 0, 0)),
        scratch_shapes=[pltpu.VMEM((24, tn), jnp.float32)] * 5,
        compiler_params=pltpu.CompilerParams(
            dimension_semantics=("parallel", "arbitrary")),
    )(uvw, p_f, p_b, xyz)

    # Tiny scalar finish (couples the two halves through the global Frobenius norms).
    sums = partials.sum(axis=0).reshape(8, 3, 5).sum(axis=0)        # [3, 5] per-component
    s_ddf, s_dxf, s_ddb, s_dxb, s_xx = (sums[:, q] for q in range(5))
    dot = jnp.sum(s_dxf * lax.rsqrt(s_ddf)) + jnp.sum(s_dxb * lax.rsqrt(s_ddb))
    total = 6.0 - 2.0 * dot + 2.0 * jnp.sum(s_xx)          # xx counted once per branch
    return jnp.asarray(weight, jnp.float32) * total * (1.0 / 8.0)


def _reference(uvw_f, uvw_b, uvw_p_f, uvw_p_b, xyz_p, weight):
    """Pure-JAX reference mirroring the PyTorch forward."""
    def branch(uvw, p):
        loss_rows = jnp.zeros((8,), jnp.float32)
        for c in range(3):
            d = uvw[:, c][None, :] - p[:, c, :]        # [8, N]
            d = d / jnp.linalg.norm(d)
            target = xyz_p[:, :, c].T                  # [8, N]
            loss_rows = loss_rows + jnp.sum((d - target) ** 2, axis=1)
        return jnp.mean(loss_rows)
    return weight * (branch(uvw_f, uvw_p_f) + branch(uvw_b, uvw_p_b))


def _run_case(key, n, weight, block_n):
    k1, k2, k3, k4, k5 = jax.random.split(key, 5)
    uvw_f = jax.random.normal(k1, (n, 3), jnp.float32)
    uvw_b = jax.random.normal(k2, (n, 3), jnp.float32)
    uvw_p_f = jax.random.normal(k3, (8, 3, n), jnp.float32)
    uvw_p_b = jax.random.normal(k4, (8, 3, n), jnp.float32)
    xyz_p = jax.random.normal(k5, (n, 8, 3), jnp.float32)

    loss = relative_positional_loss(uvw_f, uvw_b, uvw_p_f, uvw_p_b, xyz_p, weight,
                                    block_n=block_n)
    loss = jax.block_until_ready(loss)
    ref = _reference(uvw_f, uvw_b, uvw_p_f, uvw_p_b, xyz_p, weight)
    np.testing.assert_allclose(np.asarray(loss), np.asarray(ref), rtol=1e-4, atol=1e-4)


if __name__ == "__main__":
    key = jax.random.PRNGKey(0)
    k_a, k_b = jax.random.split(key)
    # Small case: N not a multiple of 128 -> exercises in-kernel tail masking.
    _run_case(k_a, n=160, weight=0.5, block_n=8192)
    # Multi-tile case with an odd tile count -> exercises the 2-way split + clamped
    # duplicate tile path with real data in both halves.
    _run_case(k_b, n=600, weight=0.25, block_n=256)
    print("KERNEL_OK")
</pallas_src>

<mosaic_0001>
module attributes {stable_mosaic.version = 11 : i64} {
  func.func @kernel(%arg0: i32, %arg1: i32, %arg2: memref<6x256xf32, #tpu.memory_space<vmem>>, %arg3: memref<24x256xf32, #tpu.memory_space<vmem>>, %arg4: memref<24x256xf32, #tpu.memory_space<vmem>>, %arg5: memref<24x256xf32, #tpu.memory_space<vmem>>, %arg6: memref<1x24x5xf32, #tpu.memory_space<vmem>>, %arg7: memref<24x256xf32, #tpu.memory_space<vmem>>, %arg8: memref<24x256xf32, #tpu.memory_space<vmem>>, %arg9: memref<24x256xf32, #tpu.memory_space<vmem>>, %arg10: memref<24x256xf32, #tpu.memory_space<vmem>>, %arg11: memref<24x256xf32, #tpu.memory_space<vmem>>) attributes {dimension_semantics = [#tpu.dimension_semantics<parallel>, #tpu.dimension_semantics<arbitrary>], iteration_bounds = array<i64: 2, 1>, scalar_prefetch = 0 : i64, scratch_operands = 5 : i64, tpu.core_type = #tpu.core_type<tc>, window_params = [{transform_indices = @transform_0, window_bounds = array<i64: 6, 256>}, {transform_indices = @transform_1, window_bounds = array<i64: 24, 256>}, {transform_indices = @transform_2, window_bounds = array<i64: 24, 256>}, {transform_indices = @transform_3, window_bounds = array<i64: 24, 256>}, {transform_indices = @transform_4, window_bounds = array<i64: 1, 24, 5>}]} {
    %c0_i32 = arith.constant 0 : i32
    %0 = arith.cmpi eq, %arg1, %c0_i32 : i32
    %1 = arith.extui %0 : i1 to i32
    %c0_i32_0 = arith.constant 0 : i32
    %2 = arith.cmpi ne, %1, %c0_i32_0 : i32
    scf.if %2 {
      %cst_32 = arith.constant 0.000000e+00 : f32
      %49 = vector.broadcast %cst_32 : f32 to vector<24x256xf32>
      %c0_33 = arith.constant 0 : index
      %c0_34 = arith.constant 0 : index
      %50 = vector.load %arg7[%c0_33, %c0_34] : memref<24x256xf32, #tpu.memory_space<vmem>>, vector<24x256xf32>
      tpu.vector_store %arg7[%c0_33, %c0_34], %49 {strides = array<i32>} : memref<24x256xf32, #tpu.memory_space<vmem>>, vector<24x256xf32>,
      %cst_35 = arith.constant 0.000000e+00 : f32
      %51 = vector.broadcast %cst_35 : f32 to vector<24x256xf32>
      %c0_36 = arith.constant 0 : index
      %c0_37 = arith.constant 0 : index
      %52 = vector.load %arg8[%c0_36, %c0_37] : memref<24x256xf32, #tpu.memory_space<vmem>>, vector<24x256xf32>
      tpu.vector_store %arg8[%c0_36, %c0_37], %51 {strides = array<i32>} : memref<24x256xf32, #tpu.memory_space<vmem>>, vector<24x256xf32>,
      %cst_38 = arith.constant 0.000000e+00 : f32
      %53 = vector.broadcast %cst_38 : f32 to vector<24x256xf32>
      %c0_39 = arith.constant 0 : index
      %c0_40 = arith.constant 0 : index
      %54 = vector.load %arg9[%c0_39, %c0_40] : memref<24x256xf32, #tpu.memory_space<vmem>>, vector<24x256xf32>
      tpu.vector_store %arg9[%c0_39, %c0_40], %53 {strides = array<i32>} : memref<24x256xf32, #tpu.memory_space<vmem>>, vector<24x256xf32>,
      %cst_41 = arith.constant 0.000000e+00 : f32
      %55 = vector.broadcast %cst_41 : f32 to vector<24x256xf32>
      %c0_42 = arith.constant 0 : index
      %c0_43 = arith.constant 0 : index
      %56 = vector.load %arg10[%c0_42, %c0_43] : memref<24x256xf32, #tpu.memory_space<vmem>>, vector<24x256xf32>
      tpu.vector_store %arg10[%c0_42, %c0_43], %55 {strides = array<i32>} : memref<24x256xf32, #tpu.memory_space<vmem>>, vector<24x256xf32>,
      %cst_44 = arith.constant 0.000000e+00 : f32
      %57 = vector.broadcast %cst_44 : f32 to vector<24x256xf32>
      %c0_45 = arith.constant 0 : index
      %c0_46 = arith.constant 0 : index
      %58 = vector.load %arg11[%c0_45, %c0_46] : memref<24x256xf32, #tpu.memory_space<vmem>>, vector<24x256xf32>
      tpu.vector_store %arg11[%c0_45, %c0_46], %57 {strides = array<i32>} : memref<24x256xf32, #tpu.memory_space<vmem>>, vector<24x256xf32>,
    } else {
    }
    %c0 = arith.constant 0 : index
    %c0_1 = arith.constant 0 : index
    %3 = vector.load %arg2[%c0, %c0_1] : memref<6x256xf32, #tpu.memory_space<vmem>>, vector<6x256xf32>
    %4 = vector.extract_strided_slice %3 {offsets = [0, 0], sizes = [3, 256], strides = [1, 1]} : vector<6x256xf32> to vector<3x256xf32>
    %5 = tpu.concatenate %4, %4, %4, %4, %4, %4, %4, %4 in 0 : vector<3x256xf32>, vector<3x256xf32>, vector<3x256xf32>, vector<3x256xf32>, vector<3x256xf32>, vector<3x256xf32>, vector<3x256xf32>, vector<3x256xf32> -> vector<24x256xf32>
    %6 = vector.extract_strided_slice %3 {offsets = [3, 0], sizes = [3, 256], strides = [1, 1]} : vector<6x256xf32> to vector<3x256xf32>
    %7 = tpu.concatenate %6, %6, %6, %6, %6, %6, %6, %6 in 0 : vector<3x256xf32>, vector<3x256xf32>, vector<3x256xf32>, vector<3x256xf32>, vector<3x256xf32>, vector<3x256xf32>, vector<3x256xf32>, vector<3x256xf32> -> vector<24x256xf32>
    %c0_2 = arith.constant 0 : index
    %c0_3 = arith.constant 0 : index
    %8 = vector.load %arg5[%c0_2, %c0_3] : memref<24x256xf32, #tpu.memory_space<vmem>>, vector<24x256xf32>
    %c0_4 = arith.constant 0 : index
    %c0_5 = arith.constant 0 : index
    %9 = vector.load %arg3[%c0_4, %c0_5] : memref<24x256xf32, #tpu.memory_space<vmem>>, vector<24x256xf32>
    %10 = arith.subf %5, %9 : vector<24x256xf32>
    %c0_6 = arith.constant 0 : index
    %c0_7 = arith.constant 0 : index
    %11 = vector.load %arg4[%c0_6, %c0_7] : memref<24x256xf32, #tpu.memory_space<vmem>>, vector<24x256xf32>
    %12 = arith.subf %7, %11 : vector<24x256xf32>
    %c1_i32 = arith.constant 1 : i32
    %13 = arith.muli %arg0, %c1_i32 : i32
    %14 = arith.addi %13, %arg1 : i32
    %c256_i32 = arith.constant 256 : i32
    %15 = arith.muli %14, %c256_i32 : i32
    %16 = tpu.iota {dimensions = array<i32: 1>} : vector<24x256xi32>
    %c160_i32 = arith.constant 160 : i32
    %17 = arith.subi %c160_i32, %15 : i32
    %18 = vector.broadcast %17 : i32 to vector<24x256xi32>
    %19 = arith.cmpi slt, %16, %18 : vector<24x256xi32>
    %cst = arith.constant 0.000000e+00 : f32
    %20 = vector.broadcast %cst : f32 to vector<24x256xf32>
    %21 = arith.select %19, %10, %20 : vector<24x256xi1>, vector<24x256xf32>
    %cst_8 = arith.constant 0.000000e+00 : f32
    %22 = vector.broadcast %cst_8 : f32 to vector<24x256xf32>
    %23 = arith.select %19, %12, %22 : vector<24x256xi1>, vector<24x256xf32>
    %cst_9 = arith.constant 0.000000e+00 : f32
    %24 = vector.broadcast %cst_9 : f32 to vector<24x256xf32>
    %25 = arith.select %19, %8, %24 : vector<24x256xi1>, vector<24x256xf32>
    %c0_10 = arith.constant 0 : index
    %c0_11 = arith.constant 0 : index
    %26 = vector.load %arg7[%c0_10, %c0_11] : memref<24x256xf32, #tpu.memory_space<vmem>>, vector<24x256xf32>
    %27 = arith.mulf %21, %21 : vector<24x256xf32>
    %28 = arith.addf %26, %27 : vector<24x256xf32>
    %c0_12 = arith.constant 0 : index
    %c0_13 = arith.constant 0 : index
    %29 = vector.load %arg7[%c0_12, %c0_13] : memref<24x256xf32, #tpu.memory_space<vmem>>, vector<24x256xf32>
    tpu.vector_store %arg7[%c0_12, %c0_13], %28 {strides = array<i32>} : memref<24x256xf32, #tpu.memory_space<vmem>>, vector<24x256xf32>,
    %c0_14 = arith.constant 0 : index
    %c0_15 = arith.constant 0 : index
    %30 = vector.load %arg8[%c0_14, %c0_15] : memref<24x256xf32, #tpu.memory_space<vmem>>, vector<24x256xf32>
    %31 = arith.mulf %21, %25 : vector<24x256xf32>
    %32 = arith.addf %30, %31 : vector<24x256xf32>
    %c0_16 = arith.constant 0 : index
    %c0_17 = arith.constant 0 : index
    %33 = vector.load %arg8[%c0_16, %c0_17] : memref<24x256xf32, #tpu.memory_space<vmem>>, vector<24x256xf32>
    tpu.vector_store %arg8[%c0_16, %c0_17], %32 {strides = array<i32>} : memref<24x256xf32, #tpu.memory_space<vmem>>, vector<24x256xf32>,
    %c0_18 = arith.constant 0 : index
    %c0_19 = arith.constant 0 : index
    %34 = vector.load %arg9[%c0_18, %c0_19] : memref<24x256xf32, #tpu.memory_space<vmem>>, vector<24x256xf32>
    %35 = arith.mulf %23, %23 : vector<24x256xf32>
    %36 = arith.addf %34, %35 : vector<24x256xf32>
    %c0_20 = arith.constant 0 : index
    %c0_21 = arith.constant 0 : index
    %37 = vector.load %arg9[%c0_20, %c0_21] : memref<24x256xf32, #tpu.memory_space<vmem>>, vector<24x256xf32>
    tpu.vector_store %arg9[%c0_20, %c0_21], %36 {strides = array<i32>} : memref<24x256xf32, #tpu.memory_space<vmem>>, vector<24x256xf32>,
    %c0_22 = arith.constant 0 : index
    %c0_23 = arith.constant 0 : index
    %38 = vector.load %arg10[%c0_22, %c0_23] : memref<24x256xf32, #tpu.memory_space<vmem>>, vector<24x256xf32>
    %39 = arith.mulf %23, %25 : vector<24x256xf32>
    %40 = arith.addf %38, %39 : vector<24x256xf32>
    %c0_24 = arith.constant 0 : index
    %c0_25 = arith.constant 0 : index
    %41 = vector.load %arg10[%c0_24, %c0_25] : memref<24x256xf32, #tpu.memory_space<vmem>>, vector<24x256xf32>
    tpu.vector_store %arg10[%c0_24, %c0_25], %40 {strides = array<i32>} : memref<24x256xf32, #tpu.memory_space<vmem>>, vector<24x256xf32>,
    %c0_26 = arith.constant 0 : index
    %c0_27 = arith.constant 0 : index
    %42 = vector.load %arg11[%c0_26, %c0_27] : memref<24x256xf32, #tpu.memory_space<vmem>>, vector<24x256xf32>
    %43 = arith.mulf %25, %25 : vector<24x256xf32>
    %44 = arith.addf %42, %43 : vector<24x256xf32>
    %c0_28 = arith.constant 0 : index
    %c0_29 = arith.constant 0 : index
    %45 = vector.load %arg11[%c0_28, %c0_29] : memref<24x256xf32, #tpu.memory_space<vmem>>, vector<24x256xf32>
    tpu.vector_store %arg11[%c0_28, %c0_29], %44 {strides = array<i32>} : memref<24x256xf32, #tpu.memory_space<vmem>>, vector<24x256xf32>,
    %c0_i32_30 = arith.constant 0 : i32
    %46 = arith.cmpi eq, %arg1, %c0_i32_30 : i32
    %47 = arith.extui %46 : i1 to i32
    %c0_i32_31 = arith.constant 0 : i32
    %48 = arith.cmpi ne, %47, %c0_i32_31 : i32
    scf.if %48 {
      %c0_32 = arith.constant 0 : index
      %c0_33 = arith.constant 0 : index
      %49 = vector.load %arg7[%c0_32, %c0_33] : memref<24x256xf32, #tpu.memory_space<vmem>>, vector<24x256xf32>
      %cst_34 = arith.constant dense<0.000000e+00> : vector<24xf32>
      %50 = vector.multi_reduction <add>, %49, %cst_34 [1] : vector<24x256xf32> to vector<24xf32>
      %51 = vector.shape_cast %50 : vector<24xf32> to vector<24x1xf32>
      %c0_35 = arith.constant 0 : index
      %c0_36 = arith.constant 0 : index
      %52 = vector.load %arg8[%c0_35, %c0_36] : memref<24x256xf32, #tpu.memory_space<vmem>>, vector<24x256xf32>
      %cst_37 = arith.constant dense<0.000000e+00> : vector<24xf32>
      %53 = vector.multi_reduction <add>, %52, %cst_37 [1] : vector<24x256xf32> to vector<24xf32>
      %54 = vector.shape_cast %53 : vector<24xf32> to vector<24x1xf32>
      %c0_38 = arith.constant 0 : index
      %c0_39 = arith.constant 0 : index
      %55 = vector.load %arg9[%c0_38, %c0_39] : memref<24x256xf32, #tpu.memory_space<vmem>>, vector<24x256xf32>
      %cst_40 = arith.constant dense<0.000000e+00> : vector<24xf32>
      %56 = vector.multi_reduction <add>, %55, %cst_40 [1] : vector<24x256xf32> to vector<24xf32>
      %57 = vector.shape_cast %56 : vector<24xf32> to vector<24x1xf32>
      %c0_41 = arith.constant 0 : index
      %c0_42 = arith.constant 0 : index
      %58 = vector.load %arg10[%c0_41, %c0_42] : memref<24x256xf32, #tpu.memory_space<vmem>>, vector<24x256xf32>
      %cst_43 = arith.constant dense<0.000000e+00> : vector<24xf32>
      %59 = vector.multi_reduction <add>, %58, %cst_43 [1] : vector<24x256xf32> to vector<24xf32>
      %60 = vector.shape_cast %59 : vector<24xf32> to vector<24x1xf32>
      %c0_44 = arith.constant 0 : index
      %c0_45 = arith.constant 0 : index
      %61 = vector.load %arg11[%c0_44, %c0_45] : memref<24x256xf32, #tpu.memory_space<vmem>>, vector<24x256xf32>
      %cst_46 = arith.constant dense<0.000000e+00> : vector<24xf32>
      %62 = vector.multi_reduction <add>, %61, %cst_46 [1] : vector<24x256xf32> to vector<24xf32>
      %63 = vector.shape_cast %62 : vector<24xf32> to vector<24x1xf32>
      %64 = tpu.concatenate %51, %54, %57, %60, %63 in 1 : vector<24x1xf32>, vector<24x1xf32>, vector<24x1xf32>, vector<24x1xf32>, vector<24x1xf32> -> vector<24x5xf32>
      %c0_47 = arith.constant 0 : index
      %c0_48 = arith.constant 0 : index
      %c0_49 = arith.constant 0 : index
      %65 = vector.load %arg6[%c0_47, %c0_48, %c0_49] : memref<1x24x5xf32, #tpu.memory_space<vmem>>, vector<1x24x5xf32>
      %66 = vector.shape_cast %65 : vector<1x24x5xf32> to vector<24x5xf32>
      %67 = vector.shape_cast %64 : vector<24x5xf32> to vector<1x24x5xf32>
      tpu.vector_store %arg6[%c0_47, %c0_48, %c0_49], %67 {strides = array<i32>} : memref<1x24x5xf32, #tpu.memory_space<vmem>>, vector<1x24x5xf32>,
    } else {
    }
    return
  }
  func.func @transform_0(%arg0: i32, %arg1: i32) -> (i32, i32) {
    %c1_i32 = arith.constant 1 : i32
    %0 = arith.muli %arg0, %c1_i32 : i32
    %1 = arith.addi %0, %arg1 : i32
    %c0_i32 = arith.constant 0 : i32
    %2 = arith.minsi %1, %c0_i32 : i32
    %c0_i32_0 = arith.constant 0 : i32
    %c0_i32_1 = arith.constant 0 : i32
    return %c0_i32_0, %2 : i32, i32
  }
  func.func @transform_1(%arg0: i32, %arg1: i32) -> (i32, i32) {
    %c1_i32 = arith.constant 1 : i32
    %0 = arith.muli %arg0, %c1_i32 : i32
    %1 = arith.addi %0, %arg1 : i32
    %c0_i32 = arith.constant 0 : i32
    %2 = arith.minsi %1, %c0_i32 : i32
    %c0_i32_0 = arith.constant 0 : i32
    %c0_i32_1 = arith.constant 0 : i32
    return %c0_i32_0, %2 : i32, i32
  }
  func.func @transform_2(%arg0: i32, %arg1: i32) -> (i32, i32) {
    %c1_i32 = arith.constant 1 : i32
    %0 = arith.muli %arg0, %c1_i32 : i32
    %1 = arith.addi %0, %arg1 : i32
    %c0_i32 = arith.constant 0 : i32
    %2 = arith.minsi %1, %c0_i32 : i32
    %c0_i32_0 = arith.constant 0 : i32
    %c0_i32_1 = arith.constant 0 : i32
    return %c0_i32_0, %2 : i32, i32
  }
  func.func @transform_3(%arg0: i32, %arg1: i32) -> (i32, i32) {
    %c1_i32 = arith.constant 1 : i32
    %0 = arith.muli %arg0, %c1_i32 : i32
    %1 = arith.addi %0, %arg1 : i32
    %c0_i32 = arith.constant 0 : i32
    %2 = arith.minsi %1, %c0_i32 : i32
    %c0_i32_0 = arith.constant 0 : i32
    %c0_i32_1 = arith.constant 0 : i32
    return %c0_i32_0, %2 : i32, i32
  }
  func.func @transform_4(%arg0: i32, %arg1: i32) -> (i32, i32, i32) {
    %c0_i32 = arith.constant 0 : i32
    %c0_i32_0 = arith.constant 0 : i32
    %c0_i32_1 = arith.constant 0 : i32
    return %arg0, %c0_i32, %c0_i32_0 : i32, i32, i32
  }
}

</mosaic_0001>

<bundles_post_ra>
// kernel: tpu_custom_call.1
= control target key start
LH: loop header
LB: loop body
LE: loop exit
PB: predicated region body
PF: predicated region fallthrough
CT: control target
= control target key end

     0   :  { %9 = vsyncpa [#allocation8], 0  ;;  %s1564_s0 = inlined_call_operand.hbm [shape: f32[6,160], index: 0, kind: input, shape index: {}]   ;;  %s1565_s1 = inlined_call_operand.hbm [shape: f32[24,160], index: 1, kind: input, shape index: {}]   ;;  %s1566_s2 = inlined_call_operand.hbm [shape: f32[24,160], index: 2, kind: input, shape index: {}]   ;;  %s1567_s3 = inlined_call_operand.hbm [shape: f32[24,160], index: 3, kind: input, shape index: {}]   ;;  %s1568_s4 = inlined_call_operand.vmem [shape: f32[2,24,5], index: 4, kind: output, shape index: {}]  }
   0x1   :  { %11 = vsyncpa [#allocation8 + $0x1], 0 }
   0x2   :  { %12 = vsyncpa [#allocation10], 0 }
   0x3   :  { %14 = vsyncpa [#allocation10 + $0x1], 0 }
   0x4   :  { %15 = vsyncpa [#allocation13], 0 }
   0x5   :  { %17 = vsyncpa [#allocation13 + $0x1], 0  ;;  %s1230_s15 = smov 0   ;;  %s1232_s16 = smov 0  }
   0x6   :  { %s1234_s17 = smov 0   ;;  %s1236_s18 = smov 0  }
   0x7   :  { %s1238_s19 = smov 0  }
   0x8 LB: > { %s922_s20 = sadd.s32 4294967295, %s1197_s19   ;;  %s35_s21 = sadd.s32 1, %s1193_s18  ;;  %s1197_s19 = sphi %s1238_s19, %s23_s19   ;;  %s1193_s18 = sphi %s1236_s18, %s1578_s18   ;;  %s1189_s17 = sphi %s1234_s17, %s1577_s17   ;;  %s1185_s16 = sphi %s1232_s16, %s1554_s16   ;;  %s1181_s15 = sphi %s1230_s15, %s1576_s15  }
   0x9   : > { %p37_p0 = scmp.ge.s32.totalorder %s35_s21, 2  ;;  %p1178_p1 = scmp.ne.s32.totalorder %s1185_s16, 0 }
   0xa   : > { %p56_p2 = scmp.eq.s32.totalorder %s1197_s19, 0  ;;  %p61_p3 = scmp.ne.s32.totalorder %s1185_s16, %s1181_s15 }
   0xb   : > { %s1580_s21 = smov (%p37_p0, %s35_s21), 0  ;;  %p62_p4 = scmp.eq.s32.totalorder %s922_s20, 0 }
   0xc   : > { %p57_p5 = por %p1178_p1, %p56_p2  ;;  %p971_p7 = scmp.lt.s32.totalorder %s1197_s19, 2 }
   0xd   : > { %p1262_p6 = por %p62_p4, %p61_p3  ;;  %s230_s24 = sand.u32 1, %s1197_s19  }
   0xe   : > { %p1267_p8 = pnand %p971_p7, %p57_p5  ;;  %s243_s27 = sshll.u32 %s1565_s1, 4  ;;  %s244_s27 = int_to_ptr.hbm [resolvable:$true] %s243_s27 }
   0xf   : > { %s1199_s28 = smov [#allocation9]   ;;  %p935_p9 = scmp.ge.s32.totalorder %s1197_s19, 1 }
  0x10   : > { %s245_s29 = sshll.u32 %s1199_s28, 4  ;;  %s1276_s30 = scalar_lea.sflag [#allocation10], %s230_s24  ;;  %s246_s29 = int_to_ptr.vmem [resolvable:$true] %s245_s29 }
  0x11   : > { %s1022_s5 = sshra.s32 %s244_s27, 4  ;;  %p1026_p11 = pneg %p1267_p8  ;;  %s1023_s5 = int_to_ptr.hbm [resolvable:$true] %s1022_s5 }
  0x12   : > { %s1024_s6 = scalar_lea.hbm %s1023_s5, 48  ;;  %s1029_s9 = scalar_lea.hbm %s1565_s1, 48 }
  0x13   : > { %p1025_p10 = scmp.ne.s32.totalorder %s1023_s5, %s1024_s6  ;;  %p1031_p0 = scmp.lt.s32.totalorder %s1029_s9, %s1024_s6 }
  0x15   : > { %p1027_p12 = pnand %p1026_p11, %p1025_p10 }
  0x17   : > { %p1028_p13 = pneg %p1027_p12 }
  0x19   : > { %p1033_p1 = pnand %p1031_p0, %p1028_p13 }
  0x1b   : > { %1036 = shalt.err (!%p1033_p1)
}
  0x1c   : > { %s1200_s10 = smov 256   ;;  %s1201_s11 = smov 16  }
  0x1d   : > { %964 = dma.hbm_to_vmem [thread:$0]  (!%p1267_p8), %s244_s27, 768, %s246_s29, %s1276_s30, %s1200_s10, %s1200_s10, %s1201_s11  }
  0x1e   : > { %p303_p2 = scmp.lt.s32.totalorder %s1197_s19, 3  ;;  %s221_s15 = sshll.u32 %s1564_s0, 4  ;;  %s222_s15 = int_to_ptr.hbm [resolvable:$true] %s221_s15 }
  0x1f   : > { %s1202_s24 = smov [#allocation7]   ;;  %s1052_s26 = sshra.s32 %s222_s15, 4  ;;  %s1053_s26 = int_to_ptr.hbm [resolvable:$true] %s1052_s26 }
  0x20   : > { %p1295_p3 = pnand %p935_p9, %p303_p2  ;;  %s223_s25 = sshll.u32 %s1202_s24, 4  ;;  %s224_s25 = int_to_ptr.vmem [resolvable:$true] %s223_s25 }
  0x21   : > { %s1054_s28 = scalar_lea.hbm %s1053_s26, 16  ;;  %s1059_s5 = scalar_lea.hbm %s1564_s0, 16 }
  0x22   : > { %p1055_p4 = scmp.ne.s32.totalorder %s1053_s26, %s1054_s28  ;;  %p1061_p9 = scmp.lt.s32.totalorder %s1059_s5, %s1054_s28 }
  0x24   : > { %p1057_p5 = pnand %p1055_p4, %p1026_p11 }
  0x26   : > { %p1058_p7 = pneg %p1057_p5 }
  0x28   : > { %p1063_p10 = pnand %p1061_p9, %p1058_p7 }
  0x2a   : > { %1066 = shalt.err (!%p1063_p10)
}
  0x2b   : > { %961 = dma.hbm_to_vmem [thread:$0]  (!%p1267_p8), %s222_s15, 256, %s224_s25, [#allocation8]  }
  0x2c   : > { %s268_s8 = sshll.u32 %s1566_s2, 4  ;;  %s1203_s9 = smov [#allocation11]   ;;  %s269_s8 = int_to_ptr.hbm [resolvable:$true] %s268_s8 }
  0x2d   : > { %s270_s13 = sshll.u32 %s1203_s9, 4  ;;  %s1082_s14 = sshra.s32 %s269_s8, 4  ;;  %s271_s13 = int_to_ptr.vmem [resolvable:$true] %s270_s13  ;;  %s1083_s14 = int_to_ptr.hbm [resolvable:$true] %s1082_s14 }
  0x2e   : > { %s1084_s24 = scalar_lea.hbm %s1083_s14, 48  ;;  %s1089_s15 = scalar_lea.hbm %s1566_s2, 48 }
  0x2f   : > { %p1085_p12 = scmp.ne.s32.totalorder %s1083_s14, %s1084_s24  ;;  %p1091_p1 = scmp.lt.s32.totalorder %s1089_s15, %s1084_s24 }
  0x31   : > { %p1087_p13 = pnand %p1085_p12, %p1026_p11 }
  0x33   : > { %p1088_p0 = pneg %p1087_p13 }
  0x35   : > { %p1093_p2 = pnand %p1091_p1, %p1088_p0 }
  0x37   : > { %1096 = shalt.err (!%p1093_p2)
}
  0x38   : > { %967 = dma.hbm_to_vmem [thread:$0]  (!%p1267_p8), %s269_s8, 768, %s271_s13, %s1276_s30, %s1200_s10, %s1200_s10, %s1201_s11  }
  0x39   : > { %s1204_s25 = smov [#allocation12]   ;;  %s293_s6 = sshll.u32 %s1567_s3, 4  ;;  %s294_s6 = int_to_ptr.hbm [resolvable:$true] %s293_s6 }
  0x3a   : > { %s295_s27 = sshll.u32 %s1204_s25, 4  ;;  %s1112_s7 = sshra.s32 %s294_s6, 4  ;;  %s296_s27 = int_to_ptr.vmem [resolvable:$true] %s295_s27  ;;  %s1113_s7 = int_to_ptr.hbm [resolvable:$true] %s1112_s7 }
  0x3b   : > { %s1114_s9 = scalar_lea.hbm %s1113_s7, 48  ;;  %s1119_s30 = scalar_lea.hbm %s1567_s3, 48 }
  0x3c   : > { %p1115_p4 = scmp.ne.s32.totalorder %s1113_s7, %s1114_s9  ;;  %p1121_p9 = scmp.lt.s32.totalorder %s1119_s30, %s1114_s9 }
  0x3e   : > { %p1117_p5 = pnand %p1115_p4, %p1026_p11 }
  0x40   : > { %p1118_p7 = pneg %p1117_p5 }
  0x42   : > { %p1123_p10 = pnand %p1121_p9, %p1118_p7 }
  0x44   : > { %1126 = shalt.err (!%p1123_p10)
}
  0x45   : > { %970 = dma.hbm_to_vmem [thread:$0]  (!%p1267_p8), %s294_s6, 768, %s296_s27, [#allocation13], %s1200_s10, %s1200_s10, %s1201_s11  }
  0x46   : > { %307 = sbr.rel (%p1295_p3) target bundleno = 251 (0xfb), region = 36  ;;  %s309_s8 = sand.u32 (!%p1295_p3), 1, %s1185_s16  }
  0x47   : > { %s936_s13 = sshll.u32 (!%p1295_p3), %s309_s8, 4  ;;  %s310_s26 = scalar_lea.sflag (!%p1295_p3), [#allocation8], %s309_s8 }
  0x48   : > { %s313_s28 = scalar_lea.vmem (!%p1295_p3), [#allocation7], %s936_s13 }
  0x4b   : > { %1167 = dma.done.wait (%p1262_p6), %s310_s26, 256  }
  0x4c   : > { %1169 = vsyncadd (%p1262_p6), %s310_s26, 4294967040  ;;  %s319_s23 = sand.u32 1, %s922_s20   ;;  %s948_s15 = smul.u32 48, %s309_s8 }
  0x4d   : > { %s320_s10 = scalar_lea.sflag [#allocation10], %s319_s23 }
  0x4e   : > { %s1348_s11 = scalar_lea.vmem [#allocation9], %s948_s15 }
  0x4f   : > { %1171 = dma.done.wait (%p1262_p6), %s320_s10, 1536  }
  0x50   : > { %1173 = vsyncadd (%p1262_p6), %s320_s10, 4294965760  ;;  %s1354_s12 = scalar_lea.vmem [#allocation11], %s948_s15  ;;  %s340_s25 = scalar_lea.sflag [#allocation13], %s309_s8 }
  0x51   : > { %s1356_s27 = scalar_lea.vmem [#allocation12], %s948_s15 }
  0x52   : > { %1175 = dma.done.wait (%p1262_p6), %s340_s25, 768  }
  0x53   : > { %1177 = vsyncadd (%p1262_p6), %s340_s25, 4294966528  ;;  %s938_s20 = sshll.u32 %s1189_s17, 8  ;;  %v538_v0 = vlaneseq  ;;  %vm486_vm0 = vcmask 1041408   ;;  %vm489_vm1 = vcmask 1044480   ;;  %vm471_vm4 = vcmask 1042432   ;;  %v510_v8 = vld [vmem:[%s1356_s27 + $0x20] sm:$0xff] }
  0x54   : > { %s541_s29 = ssub.s32 160, %s938_s20  ;;  %v1371_v6 = vld [vmem:[%s313_s28] sm:$0x3f]  ;;  %v1373_v7 = vld [vmem:[%s313_s28 + $0x8] sm:$0x3f]  ;;  %vm474_vm5 = vcmask 1045504  }
  0x55   : > { %v539_v1 = vand.u32 127, %v538_v0  ;;  %v542_v2 = vstv %s541_s29  ;;  %v1377_v9 = vrot.slane %v1371_v6, 1  ;;  %v1380_v10 = vrot.slane %v1373_v7, 1  ;;  %v511_v13 = vld [vmem:[%s1356_s27 + $0x28] sm:$0xff]  ;;  %v516_v16 = vld [vmem:[%s1348_s11 + $0x20] sm:$0xff]  ;;  %p400_p6 = scmp.lt.s32.totalorder %s1189_s17, 1 }
  0x56   : > { %v463_v11 = vrot.slane %v1371_v6, 6  ;;  %v464_v12 = vrot.slane %v1373_v7, 6  ;;  %v467_v14 = vrot.slane %v1371_v6, 3  ;;  %v468_v15 = vrot.slane %v1373_v7, 3  ;;  %v517_v17 = vld [vmem:[%s1348_s11 + $0x28] sm:$0xff]  ;;  %v512_v28 = vld [vmem:[%s1348_s11] sm:$0xff] }
  0x57   : > { %v540_v3 = vadd.s32 128, %v539_v1  ;;  %vm1363_vm2 = vcmp.lt.s32.totalorder %v539_v1, %v542_v2  ;;  %v1402_v22 = vrot.slane %v1371_v6, 5  ;;  %v1405_v23 = vrot.slane %v1373_v7, 5  ;;  %v513_v29 = vld [vmem:[%s1348_s11 + $0x8] sm:$0xff]  ;;  %v506_v46 = vld [vmem:[%s1356_s27] sm:$0xff]  ;;  %s1582_s17 = smov (!%p400_p6, %s1189_s17), 1 }
  0x58   : > { %v1391_v18 = vsel %vm1363_vm2, %v510_v8, 0.0  ;;  %v487_v20 = vsel %vm486_vm0, %v1377_v9, %v463_v11  ;;  %v488_v21 = vsel %vm486_vm0, %v1380_v10, %v464_v12  ;;  %v1410_v26 = vrot.slane %v1371_v6, 2  ;;  %v507_v47 = vld [vmem:[%s1356_s27 + $0x8] sm:$0xff]  ;;  %v528_v52 = vld [vmem:[%s1354_s12 + $0x20] sm:$0xff]  ;;  %s949_s22 = smul.u32 24, %s1582_s17 }
  0x59   : > { %vm1367_vm3 = vcmp.lt.s32.totalorder %v540_v3, %v542_v2  ;;  %v490_v24 = vsel %vm489_vm1, %v487_v20, %v467_v14  ;;  %v491_v25 = vsel %vm489_vm1, %v488_v21, %v468_v15  ;;  %v1413_v27 = vrot.slane %v1373_v7, 2  ;;  %v529_v53 = vld [vmem:[%s1354_s12 + $0x28] sm:$0xff]  ;;  %v524_v1 = vld [vmem:[%s1354_s12] sm:$0xff] }
  0x5a   : > { %v1395_v19 = vsel %vm1367_vm3, %v511_v13, 0.0  ;;  %v522_v30 = vsub.f32 %v490_v24, %v516_v16  ;;  %v523_v31 = vsub.f32 %v491_v25, %v517_v17  ;;  %v472_v32 = vsel %vm471_vm4, %v1371_v6, %v1402_v22  ;;  %v525_v13 = vld [vmem:[%s1354_s12 + $0x8] sm:$0xff]  ;;  %s404_s7 = scalar_lea.vmem %s1568_s4, %s949_s22 }
  0x5b   : > { %v473_v33 = vsel %vm471_vm4, %v1373_v7, %v1405_v23  ;;  %vm477_vm6 = vcmask 1040384   ;;  %v475_v34 = vsel %vm474_vm5, %v472_v32, %v1410_v26  ;;  %v1428_v36 = vrot.slane %v1371_v6, 4 }
  0x5c   : > { %v476_v35 = vsel %vm474_vm5, %v473_v33, %v1413_v27  ;;  %v1431_v37 = vrot.slane %v1373_v7, 4  ;;  %vm480_vm7 = vcmask 1043456   ;;  %v549_v38 = vsel %vm1363_vm2, %v522_v30, 0.0 }
  0x5d   : > { %v550_v39 = vsel %vm1367_vm3, %v523_v31, 0.0  ;;  %v518_v40 = vsub.f32 %v475_v34, %v512_v28  ;;  %v519_v41 = vsub.f32 %v476_v35, %v513_v29  ;;  %v597_v42 = vmul.f32 %v1391_v18, %v549_v38  ;;  %v514_v31 = vld [vmem:[%s1348_s11 + $0x10] sm:$0xff]  ;;  %v509_v35 = vld [vmem:[%s1356_s27 + $0x18] sm:$0xff] }
  0x5e   : > { %v598_v43 = vmul.f32 %v1395_v19, %v550_v39  ;;  %v573_v44 = vmul.f32 %v549_v38, %v549_v38  ;;  %v574_v45 = vmul.f32 %v550_v39, %v550_v39  ;;  %v502_v50 = vsel %vm486_vm0, %v1428_v36, %v1377_v9 }
  0x5f   : > { %v545_v48 = vsel %vm1363_vm2, %v518_v40, 0.0  ;;  %v546_v49 = vsel %vm1367_vm3, %v519_v41, 0.0  ;;  %v503_v51 = vsel %vm486_vm0, %v1431_v37, %v1380_v10  ;;  %v504_v58 = vsel %vm489_vm1, %v502_v50, %v463_v11  ;;  %v526_v50 = vld [vmem:[%s1354_s12 + $0x10] sm:$0xff] }
  0x60   : > { %v713_v54 = vadd.f32 %v598_v43, %v597_v42  ;;  %v698_v55 = vadd.f32 %v574_v45, %v573_v44  ;;  %v569_v56 = vmul.f32 %v545_v48, %v545_v48  ;;  %v570_v57 = vmul.f32 %v546_v49, %v546_v49  ;;  %v515_v42 = vld [vmem:[%s1348_s11 + $0x18] sm:$0xff] }
  0x61   : > { %v505_v59 = vsel %vm489_vm1, %v503_v51, %v464_v12  ;;  %v1457_v60 = vsel %vm1363_vm2, %v506_v46, 0.0  ;;  %v1461_v61 = vsel %vm1367_vm3, %v507_v47, 0.0  ;;  %v534_v63 = vsub.f32 %v504_v58, %v528_v52  ;;  %v527_v51 = vld [vmem:[%s1354_s12 + $0x18] sm:$0xff] }
  0x62   : > { %714 = vadd.xlane.f32.xlu2 %v713_v54  ;;  %699 = vadd.xlane.f32.xlu1 %v698_v55  ;;  %v692_v62 = vadd.f32 %v570_v57, %v569_v56  ;;  %v535_v0 = vsub.f32 %v505_v59, %v529_v53  ;;  %v451_v2 = vrot.slane %v1371_v6, 7  ;;  %v593_v3 = vmul.f32 %v1457_v60, %v545_v48 }
  0x63   : > { %v594_v8 = vmul.f32 %v1461_v61, %v546_v49  ;;  %v492_v11 = vsel %vm471_vm4, %v467_v14, %v1371_v6  ;;  %v493_v12 = vsel %vm471_vm4, %v468_v15, %v1373_v7  ;;  %v555_v16 = vsel %vm1363_vm2, %v534_v63, 0.0  ;;  %v508_v6 = vld [vmem:[%s1356_s27 + $0x10] sm:$0xff] }
  0x64   : > { %693 = vadd.xlane.f32.xlu0 %v692_v62  ;;  %v556_v17 = vsel %vm1367_vm3, %v535_v0, 0.0  ;;  %v494_v20 = vsel %vm474_vm5, %v492_v11, %v1402_v22  ;;  %v495_v21 = vsel %vm474_vm5, %v493_v12, %v1405_v23  ;;  %v621_v14 = vmul.f32 %v555_v16, %v555_v16 }
  0x65   : > { %v622_v24 = vmul.f32 %v556_v17, %v556_v17  ;;  %v530_v15 = vsub.f32 %v494_v20, %v524_v1  ;;  %vm483_vm8 = vcmask 1046528   ;;  %v707_v25 = vadd.f32 %v594_v8, %v593_v3 }
  0x66   : > { %v531_v28 = vsub.f32 %v495_v21, %v525_v13  ;;  %v452_v29 = vrot.slane %v1373_v7, 7  ;;  %v478_v30 = vsel %vm477_vm6, %v1410_v26, %v451_v2  ;;  %v559_v38 = vsel %vm1363_vm2, %v508_v6, 0.0 }
  0x67   : > { %v728_v32 = vadd.f32 %v622_v24, %v621_v14  ;;  %v551_v33 = vsel %vm1363_vm2, %v530_v15, 0.0  ;;  %v481_v34 = vsel %vm480_vm7, %v478_v30, %v1428_v36  ;;  %v496_v46 = vsel %vm477_vm6, %v1402_v22, %v1410_v26 }
  0x68   : > { %v552_v39 = vsel %vm1367_vm3, %v531_v28, 0.0  ;;  %v617_v7 = vmul.f32 %v551_v33, %v551_v33  ;;  %v479_v40 = vsel %vm477_vm6, %v1413_v27, %v452_v29  ;;  %v484_v41 = vsel %vm483_vm8, %v481_v34, %v1377_v9 }
  0x69   : > { %v618_v43 = vmul.f32 %v552_v39, %v552_v39  ;;  %v482_v44 = vsel %vm480_vm7, %v479_v40, %v1431_v37  ;;  %v520_v45 = vsub.f32 %v484_v41, %v514_v31  ;;  %v560_v48 = vsel %vm1367_vm3, %v509_v35, 0.0 }
  0x6a   : > { %729 = vadd.xlane.f32.xlu2 %v728_v32  ;;  %708 = vadd.xlane.f32.xlu1 %v707_v25  ;;  %v485_v47 = vsel %vm483_vm8, %v482_v44, %v1380_v10  ;;  %v497_v9 = vsel %vm477_vm6, %v1405_v23, %v1413_v27  ;;  %v498_v49 = vsel %vm480_vm7, %v496_v46, %v451_v2  ;;  %vm761_vm9 = vcmask 7168  }
  0x6b   : > { %v722_v52 = vadd.f32 %v618_v43, %v617_v7  ;;  %v521_v53 = vsub.f32 %v485_v47, %v515_v42  ;;  %v547_v22 = vsel %vm1363_vm2, %v520_v45, 0.0  ;;  %v499_v26 = vsel %vm480_vm7, %v497_v9, %v452_v29 }
  0x6c   : > { %v595_v54 = vmul.f32 %v559_v38, %v547_v22  ;;  %v500_v10 = vsel %vm483_vm8, %v498_v49, %v1428_v36  ;;  %v501_v55 = vsel %vm483_vm8, %v499_v26, %v1431_v37  ;;  %v571_v57 = vmul.f32 %v547_v22, %v547_v22 }
  0x6d   : > { %723 = vadd.xlane.f32.xlu0 %v722_v52  ;;  %v548_v23 = vsel %vm1367_vm3, %v521_v53, 0.0  ;;  %v532_v27 = vsub.f32 %v500_v10, %v526_v50  ;;  %v533_v56 = vsub.f32 %v501_v55, %v527_v51  ;;  %v645_v3 = vmul.f32 %v1391_v18, %v555_v16 }
  0x6e   : > { %v596_v58 = vmul.f32 %v560_v48, %v548_v23  ;;  %v572_v59 = vmul.f32 %v548_v23, %v548_v23  ;;  %v646_v8 = vmul.f32 %v1395_v19, %v556_v17  ;;  %v641_v4 = vmul.f32 %v1457_v60, %v551_v33 }
  0x6f   : > { %v553_v62 = vsel %vm1363_vm2, %v532_v27, 0.0  ;;  %v554_v63 = vsel %vm1367_vm3, %v533_v56, 0.0  ;;  %v642_v13 = vmul.f32 %v1461_v61, %v552_v39  ;;  %v669_v6 = vmul.f32 %v1391_v18, %v1391_v18 }
  0x70   : > { %v710_v0 = vadd.f32 %v596_v58, %v595_v54  ;;  %v619_v36 = vmul.f32 %v553_v62, %v553_v62  ;;  %v620_v1 = vmul.f32 %v554_v63, %v554_v63  ;;  %v695_v2 = vadd.f32 %v572_v59, %v571_v57 }
  0x71   : > { %v643_v11 = vmul.f32 %v559_v38, %v553_v62  ;;  %v644_v12 = vmul.f32 %v560_v48, %v554_v63  ;;  %v743_v5 = vadd.f32 %v646_v8, %v645_v3  ;;  %v737_v21 = vadd.f32 %v642_v13, %v641_v4 }
  0x72   : > { %711 = vadd.xlane.f32.xlu2 %v710_v0  ;;  %v725_v37 = vadd.f32 %v620_v1, %v619_v36  ;;  %v670_v16 = vmul.f32 %v1395_v19, %v1395_v19  ;;  %v667_v17 = vmul.f32 %v559_v38, %v559_v38  ;;  %v668_v14 = vmul.f32 %v560_v48, %v560_v48 }
  0x73   : > { %v740_v20 = vadd.f32 %v644_v12, %v643_v11  ;;  %v665_v24 = vmul.f32 %v1457_v60, %v1457_v60  ;;  %v666_v15 = vmul.f32 %v1461_v61, %v1461_v61  ;;  %vm765_vm10 = vcmask 15360  }
  0x74   : > { %726 = vadd.xlane.f32.xlu1 %v725_v37  ;;  %v758_v25 = vadd.f32 %v670_v16, %v669_v6  ;;  %v755_v28 = vadd.f32 %v668_v14, %v667_v17  ;;  %vm769_vm11 = vcmask 23552   ;;  %vm773_vm12 = vcmask 31744  }
  0x75   : > { %696 = vadd.xlane.f32.xlu0 %v695_v2  ;;  %v752_v29 = vadd.f32 %v666_v15, %v665_v24  ;;  %vm777_vm13 = vcmask 39936  }
  0x7a   : > { %744 = vadd.xlane.f32.xlu2 %v743_v5 }
  0x7c   : > { %741 = vadd.xlane.f32.xlu1 %v740_v20 }
  0x7d   : > { %738 = vadd.xlane.f32.xlu0 %v737_v21 }
  0x82   : > { %759 = vadd.xlane.f32.xlu2 %v758_v25 }
  0x84   : > { %756 = vadd.xlane.f32.xlu1 %v755_v28 }
  0x85   : > { %753 = vadd.xlane.f32.xlu0 %v752_v29 }
  0xd5   : > { %v715_v18 = vpop.xlane.xlu2 %714  ;;  %v700_v19 = vpop.xlane.xlu1 %699 }
  0xd6   : > { %v764_v7 = vsel %vm761_vm9, %v700_v19, %v715_v18 }
  0xd7   : > { %v694_v30 = vpop.xlane.xlu0 %693 }
  0xdd   : > { %v730_v31 = vpop.xlane.xlu2 %729  ;;  %v709_v32 = vpop.xlane.xlu1 %708 }
  0xde   : > { %v768_v41 = vsel %vm765_vm10, %v764_v7, %v730_v31  ;;  %v762_v42 = vsel %vm761_vm9, %v694_v30, %v709_v32 }
  0xe0   : > { %v724_v33 = vpop.xlane.xlu0 %723 }
  0xe1   : > { %v766_v47 = vsel %vm765_vm10, %v762_v42, %v724_v33 }
  0xe5   : > { %v712_v34 = vpop.xlane.xlu2 %711 }
  0xe7   : > { %v727_v35 = vpop.xlane.xlu1 %726 }
  0xe8   : > { %v697_v60 = vpop.xlane.xlu0 %696 }
  0xe9   : > { %v763_v40 = vsel %vm761_vm9, %v697_v60, %v712_v34 }
  0xea   : > { %v767_v45 = vsel %vm765_vm10, %v763_v40, %v727_v35 }
  0xed   : > { %v745_v61 = vpop.xlane.xlu2 %744 }
  0xee   : > { %v772_v43 = vsel %vm769_vm11, %v768_v41, %v745_v61 }
  0xef   : > { %v742_v38 = vpop.xlane.xlu1 %741 }
  0xf0   : > { %v739_v39 = vpop.xlane.xlu0 %738  ;;  %v771_v48 = vsel %vm769_vm11, %v767_v45, %v742_v38 }
  0xf1   : > { %v770_v49 = vsel %vm769_vm11, %v766_v47, %v739_v39 }
  0xf5   : > { %v760_v44 = vpop.xlane.xlu2 %759 }
  0xf6   : > { %v776_v46 = vsel %vm773_vm12, %v772_v43, %v760_v44 }
  0xf7   : > { %780 = vst.msk [vmem:[%s404_s7 + $0x10] sm:$0xff] %vm777_vm13, %v776_v46  ;;  %v757_v9 = vpop.xlane.xlu1 %756 }
  0xf8   : > { %v775_v50 = vsel %vm773_vm12, %v771_v48, %v757_v9  ;;  %v754_v51 = vpop.xlane.xlu0 %753 }
  0xf9   : > { %779 = vst.msk [vmem:[%s404_s7 + $0x8] sm:$0xff] %vm777_vm13, %v775_v50  ;;  %v774_v52 = vsel %vm773_vm12, %v770_v49, %v754_v51 }
  0xfa   : > { %778 = vst.msk [vmem:[%s404_s7] sm:$0xff] %vm777_vm13, %v774_v52 }
  0xfb PF: > { %s23_s19 = sadd.s32 1, %s1197_s19   ;;  %s1576_s15 = smov %s1185_s16 }
  0xfc   : > { %p20_p8 = scmp.ge.s32.totalorder %s23_s19, 4   ;;  %s1554_s16 = smov 0  }
  0xfd   : > { %s1577_s17 = smov %s1193_s18  ;;  %s1578_s18 = smov %s1580_s21 }
  0xfe   :  { %22 = sbr.rel (!%p20_p8) target bundleno = 8 (0x8), region = 121 }
 0x103   :  { %802 = vsyncpa [#allocation8], 1 }
 0x104   :  { %804 = vsyncpa [#allocation8 + $0x1], 1 }
 0x105   :  { %805 = vsyncpa [#allocation10], 1 }
 0x106   :  { %807 = vsyncpa [#allocation10 + $0x1], 1 }
 0x107   :  { %808 = vsyncpa [#allocation13], 1 }
 0x108   :  { %810 = vsyncpa [#allocation13 + $0x1], 1 }

</bundles_post_ra>
